<compile_context>
chip_gen: v5e
topology: v5e:2x2
jax: 0.10.0
libtpu: 0.0.40
codegen_flags: <defaults>
</compile_context>

<pallas_src>
import jax
import jax.numpy as jnp
from jax.experimental import pallas as pl
from jax.experimental.pallas import tpu as pltpu

INPUT_DIM = 43
HIDDEN_DIM = 128
HIDDEN2_DIM = 64
OUT_DIM = 1
MAX_TB = 2048        # batch tile cap (multiple of 16)


def _round_up(v, m):
    return -(-v // m) * m


def mlp_kernel(x_ref, w1_ref, b1_ref, w2_ref, b2_ref, w3_ref, b3_ref, o_ref):
    # x_ref: (tb, 43) f32 tile; cast to bf16 in-kernel (hidden under the DMA).
    x = x_ref[...].astype(jnp.bfloat16)

    # Layer 1: (tb,43) @ (43,128) on the MXU (Mosaic pads K=43), f32 accumulation.
    h1 = jnp.dot(x, w1_ref[...], preferred_element_type=jnp.float32) + b1_ref[...]
    h1 = jnp.maximum(h1, 0.0)          # ReLU; Dropout(0.3) is identity at inference

    # Layer 2: (tb,128) @ (128,64) on the MXU, f32 accumulation.
    h2 = jnp.dot(h1.astype(jnp.bfloat16), w2_ref[...],
                 preferred_element_type=jnp.float32) + b2_ref[...]
    h2 = jnp.maximum(h2, 0.0)          # ReLU; Dropout(0.3) is identity at inference

    # Layer 3 (out_features=1): contract w3 (1,64) against h2 (tb,64) along the
    # 64-dim (q@k^T-style dot_general) -> lane-dense (1, tb) row so the output
    # store is unmasked full vregs instead of masked single-lane stores.
    logits = jax.lax.dot_general(
        w3_ref[...], h2,
        dimension_numbers=(((1,), (1,)), ((), ())),
        preferred_element_type=jnp.float32,
    ) + b3_ref[0, 0]                   # scalar bias from SMEM

    o_ref[...] = jax.nn.sigmoid(logits).reshape(o_ref.shape)


def _choose_tb(b):
    if b <= 16:
        return _round_up(b, 8)
    # Split into >= 2 tiles when possible so both v7x TensorCores get work;
    # cap the tile so per-step VMEM / spill stays modest.
    return min(MAX_TB, _round_up(pl.cdiv(b, 2), 16))


def neural_network_forward(x, prepared):
    """x: (B, ...) float32 (flattened to (B, INPUT_DIM)); prepared: see prepare_params."""
    x = x.reshape(x.shape[0], -1)                  # nn.Flatten
    b, f = x.shape
    assert f == INPUT_DIM, f"expected {INPUT_DIM} features, got {f}"

    tb = _choose_tb(b)
    n_tiles = pl.cdiv(b, tb)
    b_pad = n_tiles * tb
    if b_pad != b:                                 # ragged tail only; no feature pad
        x = jnp.pad(x, ((0, b_pad - b), (0, 0)))

    out = pl.pallas_call(
        mlp_kernel,
        out_shape=jax.ShapeDtypeStruct((n_tiles, 1, tb), jnp.float32),
        grid=(n_tiles,),
        in_specs=[
            pl.BlockSpec((tb, INPUT_DIM), lambda i: (i, 0)),                 # x: batch-tiled, f32
            pl.BlockSpec((INPUT_DIM, HIDDEN_DIM), lambda i: (0, 0)),         # w1: resident bf16
            pl.BlockSpec((1, HIDDEN_DIM), lambda i: (0, 0)),                 # b1: resident f32
            pl.BlockSpec((HIDDEN_DIM, HIDDEN2_DIM), lambda i: (0, 0)),       # w2: resident bf16
            pl.BlockSpec((1, HIDDEN2_DIM), lambda i: (0, 0)),                # b2: resident f32
            pl.BlockSpec((1, HIDDEN2_DIM), lambda i: (0, 0)),                # w3 row: resident f32
            pl.BlockSpec(memory_space=pltpu.MemorySpace.SMEM),               # b3: (1,1) scalar in SMEM
        ],
        out_specs=pl.BlockSpec((1, 1, tb), lambda i: (i, 0, 0)),             # lane-dense row per tile
        compiler_params=pltpu.CompilerParams(
            dimension_semantics=("parallel",),
        ),
    )(x, prepared["w1"], prepared["b1"], prepared["w2"], prepared["b2"],
      prepared["w3_row"], prepared["b3"])

    return out.reshape(b_pad, OUT_DIM)[:b]


def init_params(key):
    """Deterministic init mimicking nn.Linear's U(-1/sqrt(fan_in), 1/sqrt(fan_in))."""
    def linear(key, fan_in, fan_out):
        kw, kb = jax.random.split(key)
        bound = 1.0 / jnp.sqrt(float(fan_in))
        # stored as (in, out) so the kernel can do x @ W
        w = jax.random.uniform(kw, (fan_in, fan_out), jnp.float32, -bound, bound)
        b = jax.random.uniform(kb, (1, fan_out), jnp.float32, -bound, bound)
        return w, b

    k1, k2, k3 = jax.random.split(key, 3)
    w1, b1 = linear(k1, INPUT_DIM, HIDDEN_DIM)
    w2, b2 = linear(k2, HIDDEN_DIM, HIDDEN2_DIM)
    w3, b3 = linear(k3, HIDDEN2_DIM, OUT_DIM)
    return {"w1": w1, "b1": b1, "w2": w2, "b2": b2, "w3": w3, "b3": b3}


def prepare_params(params):
    """One-time weight prep, hoisted out of the per-call path."""
    return {
        "w1": params["w1"].astype(jnp.bfloat16),         # (43, 128) bf16
        "b1": params["b1"].reshape(1, HIDDEN_DIM),        # (1, 128)  f32
        "w2": params["w2"].astype(jnp.bfloat16),         # (128, 64) bf16
        "b2": params["b2"].reshape(1, HIDDEN2_DIM),       # (1, 64)   f32
        "w3_row": params["w3"].reshape(1, HIDDEN2_DIM),   # (1, 64)   f32 (row for the head)
        "b3": params["b3"].reshape(1, 1),                 # (1, 1)    f32 (SMEM scalar)
    }


def reference_forward(x, params):
    """Pure-JAX f32 reference (eval mode: dropout is identity)."""
    x = x.reshape(x.shape[0], -1)
    h1 = jnp.maximum(x @ params["w1"] + params["b1"], 0.0)
    h2 = jnp.maximum(h1 @ params["w2"] + params["b2"], 0.0)
    return jax.nn.sigmoid(h2 @ params["w3"] + params["b3"])


if __name__ == "__main__":
    key = jax.random.PRNGKey(0)
    k_params, k_x = jax.random.split(key)

    params = init_params(k_params)
    prepared = prepare_params(params)   # hoisted weight prep (done once)

    # nn.Flatten() collapses everything after the batch dim; provide an already
    # 2-D input (batch=8, features=43), consistent with input_dim=43.
    x = jax.random.normal(k_x, (8, INPUT_DIM), dtype=jnp.float32)

    out = neural_network_forward(x, prepared)
    out = jax.block_until_ready(out)

    assert out.shape == (8, OUT_DIM)
    assert bool(jnp.all((out >= 0.0) & (out <= 1.0)))

    ref = reference_forward(x, params)
    assert bool(jnp.all(jnp.abs(out - ref) < 5e-2))   # bf16 matmul tolerance

    print("KERNEL_OK")
</pallas_src>

<mosaic_0001>
module attributes {stable_mosaic.version = 11 : i64} {
  func.func @mlp_kernel(%arg0: i32, %arg1: memref<8x43xf32, #tpu.memory_space<vmem>>, %arg2: memref<43x128xbf16, #tpu.memory_space<vmem>>, %arg3: memref<1x128xf32, #tpu.memory_space<vmem>>, %arg4: memref<128x64xbf16, #tpu.memory_space<vmem>>, %arg5: memref<1x64xf32, #tpu.memory_space<vmem>>, %arg6: memref<1x64xf32, #tpu.memory_space<vmem>>, %arg7: memref<1x1xf32, #tpu.memory_space<smem>>, %arg8: memref<1x1x8xf32, #tpu.memory_space<vmem>>) attributes {dimension_semantics = [#tpu.dimension_semantics<parallel>], iteration_bounds = array<i64: 1>, scalar_prefetch = 0 : i64, scratch_operands = 0 : i64, tpu.core_type = #tpu.core_type<tc>, window_params = [{transform_indices = @transform_0, window_bounds = array<i64: 8, 43>}, {pipeline_mode = #tpu.pipeline_mode<synchronous>, transform_indices = @transform_1, window_bounds = array<i64: 43, 128>}, {pipeline_mode = #tpu.pipeline_mode<synchronous>, transform_indices = @transform_2, window_bounds = array<i64: 1, 128>}, {pipeline_mode = #tpu.pipeline_mode<synchronous>, transform_indices = @transform_3, window_bounds = array<i64: 128, 64>}, {pipeline_mode = #tpu.pipeline_mode<synchronous>, transform_indices = @transform_4, window_bounds = array<i64: 1, 64>}, {pipeline_mode = #tpu.pipeline_mode<synchronous>, transform_indices = @transform_5, window_bounds = array<i64: 1, 64>}, {transform_indices = @transform_6, window_bounds = array<i64: 1, 1>}, {transform_indices = @transform_7, window_bounds = array<i64: 1, 1, 8>}]} {
    %c0 = arith.constant 0 : index
    %c0_0 = arith.constant 0 : index
    %0 = vector.load %arg1[%c0, %c0_0] : memref<8x43xf32, #tpu.memory_space<vmem>>, vector<8x43xf32>
    %1 = arith.truncf %0 : vector<8x43xf32> to vector<8x43xbf16>
    %c0_1 = arith.constant 0 : index
    %c0_2 = arith.constant 0 : index
    %2 = vector.load %arg2[%c0_1, %c0_2] : memref<43x128xbf16, #tpu.memory_space<vmem>>, vector<43x128xbf16>
    %cst = arith.constant dense<0.000000e+00> : vector<8x128xf32>
    %3 = tpu.matmul %1, %2, %cst {dimension_numbers = #tpu.dot_dimension_numbers<[1], [0], [0], [1], [0, 0, 1, 1], [], []>} : vector<8x43xbf16>, vector<43x128xbf16>, vector<8x128xf32> -> vector<8x128xf32>
    %c0_3 = arith.constant 0 : index
    %c0_4 = arith.constant 0 : index
    %4 = vector.load %arg3[%c0_3, %c0_4] : memref<1x128xf32, #tpu.memory_space<vmem>>, vector<1x128xf32>
    %5 = vector.broadcast %4 : vector<1x128xf32> to vector<8x128xf32>
    %6 = arith.addf %3, %5 : vector<8x128xf32>
    %cst_5 = arith.constant 0.000000e+00 : f32
    %7 = vector.broadcast %cst_5 : f32 to vector<8x128xf32>
    %8 = arith.maximumf %6, %7 : vector<8x128xf32>
    %9 = arith.truncf %8 : vector<8x128xf32> to vector<8x128xbf16>
    %c0_6 = arith.constant 0 : index
    %c0_7 = arith.constant 0 : index
    %10 = vector.load %arg4[%c0_6, %c0_7] : memref<128x64xbf16, #tpu.memory_space<vmem>>, vector<128x64xbf16>
    %cst_8 = arith.constant dense<0.000000e+00> : vector<8x64xf32>
    %11 = tpu.matmul %9, %10, %cst_8 {dimension_numbers = #tpu.dot_dimension_numbers<[1], [0], [0], [1], [0, 0, 1, 1], [], []>} : vector<8x128xbf16>, vector<128x64xbf16>, vector<8x64xf32> -> vector<8x64xf32>
    %c0_9 = arith.constant 0 : index
    %c0_10 = arith.constant 0 : index
    %12 = vector.load %arg5[%c0_9, %c0_10] : memref<1x64xf32, #tpu.memory_space<vmem>>, vector<1x64xf32>
    %13 = vector.broadcast %12 : vector<1x64xf32> to vector<8x64xf32>
    %14 = arith.addf %11, %13 : vector<8x64xf32>
    %cst_11 = arith.constant 0.000000e+00 : f32
    %15 = vector.broadcast %cst_11 : f32 to vector<8x64xf32>
    %16 = arith.maximumf %14, %15 : vector<8x64xf32>
    %c0_12 = arith.constant 0 : index
    %c0_13 = arith.constant 0 : index
    %17 = vector.load %arg6[%c0_12, %c0_13] : memref<1x64xf32, #tpu.memory_space<vmem>>, vector<1x64xf32>
    %cst_14 = arith.constant dense<0.000000e+00> : vector<1x8xf32>
    %18 = tpu.matmul %17, %16, %cst_14 {dimension_numbers = #tpu.dot_dimension_numbers<[1], [1], [0], [0], [0, 0, 1, 0], [], []>} : vector<1x64xf32>, vector<8x64xf32>, vector<1x8xf32> -> vector<1x8xf32>
    %c0_15 = arith.constant 0 : index
    %c0_16 = arith.constant 0 : index
    %19 = memref.load %arg7[%c0_15, %c0_16] : memref<1x1xf32, #tpu.memory_space<smem>>
    %20 = vector.broadcast %19 : f32 to vector<1x8xf32>
    %21 = arith.addf %18, %20 : vector<1x8xf32>
    %22 = arith.negf %21 : vector<1x8xf32>
    %23 = math.exp %22 : vector<1x8xf32>
    %cst_17 = arith.constant 1.000000e+00 : f32
    %24 = vector.broadcast %cst_17 : f32 to vector<1x8xf32>
    %25 = arith.addf %24, %23 : vector<1x8xf32>
    %26 = arith.divf %24, %25 : vector<1x8xf32>
    %27 = vector.shape_cast %26 : vector<1x8xf32> to vector<1x1x8xf32>
    %c0_18 = arith.constant 0 : index
    %c0_19 = arith.constant 0 : index
    %c0_20 = arith.constant 0 : index
    %28 = vector.load %arg8[%c0_18, %c0_19, %c0_20] : memref<1x1x8xf32, #tpu.memory_space<vmem>>, vector<1x1x8xf32>
    tpu.vector_store %arg8[%c0_18, %c0_19, %c0_20], %27 {strides = array<i32>} : memref<1x1x8xf32, #tpu.memory_space<vmem>>, vector<1x1x8xf32>,
    return
  }
  func.func @transform_0(%arg0: i32) -> (i32, i32) {
    %c0_i32 = arith.constant 0 : i32
    %c0_i32_0 = arith.constant 0 : i32
    return %arg0, %c0_i32 : i32, i32
  }
  func.func @transform_1(%arg0: i32) -> (i32, i32) {
    %c0_i32 = arith.constant 0 : i32
    %c0_i32_0 = arith.constant 0 : i32
    %c0_i32_1 = arith.constant 0 : i32
    return %c0_i32, %c0_i32_0 : i32, i32
  }
  func.func @transform_2(%arg0: i32) -> (i32, i32) {
    %c0_i32 = arith.constant 0 : i32
    %c0_i32_0 = arith.constant 0 : i32
    %c0_i32_1 = arith.constant 0 : i32
    return %c0_i32, %c0_i32_0 : i32, i32
  }
  func.func @transform_3(%arg0: i32) -> (i32, i32) {
    %c0_i32 = arith.constant 0 : i32
    %c0_i32_0 = arith.constant 0 : i32
    %c0_i32_1 = arith.constant 0 : i32
    return %c0_i32, %c0_i32_0 : i32, i32
  }
  func.func @transform_4(%arg0: i32) -> (i32, i32) {
    %c0_i32 = arith.constant 0 : i32
    %c0_i32_0 = arith.constant 0 : i32
    %c0_i32_1 = arith.constant 0 : i32
    return %c0_i32, %c0_i32_0 : i32, i32
  }
  func.func @transform_5(%arg0: i32) -> (i32, i32) {
    %c0_i32 = arith.constant 0 : i32
    %c0_i32_0 = arith.constant 0 : i32
    %c0_i32_1 = arith.constant 0 : i32
    return %c0_i32, %c0_i32_0 : i32, i32
  }
  func.func @transform_6(%arg0: i32) -> (i32, i32) {
    %c0_i32 = arith.constant 0 : i32
    %c0_i32_0 = arith.constant 0 : i32
    %c0_i32_1 = arith.constant 0 : i32
    return %c0_i32, %c0_i32_0 : i32, i32
  }
  func.func @transform_7(%arg0: i32) -> (i32, i32, i32) {
    %c0_i32 = arith.constant 0 : i32
    %c0_i32_0 = arith.constant 0 : i32
    %c0_i32_1 = arith.constant 0 : i32
    return %arg0, %c0_i32, %c0_i32_0 : i32, i32, i32
  }
}

</mosaic_0001>

<bundles_post_ra>
// kernel: tpu_custom_call.1
= control target key start
LH: loop header
LB: loop body
LE: loop exit
PB: predicated region body
PF: predicated region fallthrough
CT: control target
= control target key end

     0   :  { %vm62_vm0 = vcmask 1044480   ;;  %vm63_vm1 = vcmask 1045504   ;;  %v326_v3 = vmov 65535   ;;  %s422_s0 = inlined_call_operand.vmem [shape: f32[8,43], index: 0, kind: input, shape index: {}]   ;;  %s423_s1 = inlined_call_operand.vmem [shape: bf16[43,128], index: 1, kind: input, shape index: {}]   ;;  %s424_s2 = inlined_call_operand.vmem [shape: f32[1,128], index: 2, kind: input, shape index: {}]   ;;  %s425_s3 = inlined_call_operand.vmem [shape: bf16[128,64], index: 3, kind: input, shape index: {}]   ;;  %s426_s4 = inlined_call_operand.vmem [shape: f32[1,64], index: 4, kind: input, shape index: {}]   ;;  %s427_s5 = inlined_call_operand.vmem [shape: f32[1,64], index: 5, kind: input, shape index: {}]   ;;  %s428_s6 = inlined_call_operand.<no memory space> [shape: f32[1,1], index: 6, kind: input, shape index: {}]   ;;  %s429_s7 = inlined_call_operand.hbm [shape: f32[1,1,8], index: 7, kind: output, shape index: {}]  }
   0x1   :  { %v243_v0 = vld [vmem:[%s423_s1 + $0x10] sm:$0xf]  ;;  %v283_v1 = vld [vmem:[%s423_s1 + $0x10] sm:$0x30]  ;;  %v64_v4 = vsel %vm62_vm0, 4294967295, %v326_v3  ;;  %v291_v5 = vld [vmem:[%s425_s3 + $0x38] sm:$0xff] }
   0x2   :  { %v244_v2 = vor.u32 %v283_v1, %v243_v0  ;;  %v65_v6 = vsel %vm63_vm1, %v64_v4, 0  ;;  %152 = vmatpush.bf16.msra.mxu1 %v291_v5  ;;  %v290_v8 = vld [vmem:[%s425_s3 + $0x30] sm:$0xff] }
   0x4   :  { %v67_v7 = vand.u32 %v244_v2, %v65_v6 }
   0x5   :  { %13 = vsyncpa [#allocation4], 0  ;;  %v282_v9 = vld [vmem:[%s423_s1 + $0x8] sm:$0xff]  ;;  %v281_v11 = vld [vmem:[%s423_s1] sm:$0xff]  ;;  %vm58_vm2 = vcmask 351232   ;;  %vm169_vm3 = vcmask 523264   ;;  %v168_v31 = vstv %s428_s6 }
   0x6   :  { %74 = vmatpush.bf16.msra.mxu0 %v67_v7  ;;  %153 = vmatpush.bf16.msra.mxu1 %v290_v8  ;;  %v289_v10 = vld [vmem:[%s425_s3 + $0x28] sm:$0xff]  ;;  %v29_v12 = vld [vmem:[%s422_s0] sm:$0xff]  ;;  %v287_v15 = vld [vmem:[%s425_s3 + $0x18] sm:$0xff]  ;;  %s224_s6 = sshll.u32 %s429_s7, 4  ;;  %vm215_vm7 = vcmask 57344   ;;  %s225_s6 = int_to_ptr.hbm [resolvable:$true] %s224_s6 }
   0x7   :  { %v288_v13 = vld [vmem:[%s425_s3 + $0x20] sm:$0xff]  ;;  %v30_v14 = vpack.c.bf16 %v29_v12, %v29_v12  ;;  %v286_v16 = vld [vmem:[%s425_s3 + $0x10] sm:$0xff]  ;;  %v285_v17 = vld [vmem:[%s425_s3 + $0x8] sm:$0xff] }
   0x8   :  { %v284_v18 = vld [vmem:[%s425_s3] sm:$0xff] }
   0x9   :  { %v294_v19 = vld [vmem:[%s424_s2] ss:$0 sm:$0xff] }
   0xa   :  { %75 = vmatpush.bf16.msra.mxu0 %v282_v9  ;;  %154 = vmatpush.bf16.msra.mxu1 %v289_v10  ;;  %v295_v25 = vld [vmem:[%s426_s4] ss:$0 sm:$0xff]  ;;  %s327_s4 = smov [#allocation3]  }
   0xb   :  { %v166_v29 = vld [vmem:[%s427_s5] sm:$0x1]  ;;  %s222_s5 = sshll.u32 %s327_s4, 4  ;;  %s223_s5 = int_to_ptr.vmem [resolvable:$true] %s222_s5 }
   0xe   :  { %76 = vmatpush.bf16.msra.mxu0 %v281_v11  ;;  %155 = vmatpush.bf16.msra.mxu1 %v288_v13 }
  0x11   :  { %245 = vmatmul.msk.bf16.vlgmr.msra.gmra.mxu0 %vm58_vm2, %v30_v14 }
  0x12   :  { %156 = vmatpush.bf16.msra.mxu1 %v287_v15 }
  0x16   :  { %157 = vmatpush.bf16.msra.mxu1 %v286_v16 }
  0x1a   :  { %158 = vmatpush.bf16.msra.mxu1 %v285_v17 }
  0x1e   :  { %159 = vmatpush.bf16.msra.mxu1 %v284_v18 }
  0x8e   :  { %v78_v20 = vpop.f32.mrf.mxu0 }
  0x8f   :  { %v79_v21 = vadd.f32 %v294_v19, %v78_v20 }
  0x91   :  { %v82_v22 = vmax.f32 %v79_v21, 0.0 }
  0x93   :  { %v83_v23 = vpack.c.bf16 %v82_v22, %v82_v22 }
  0x95   :  { %160 = vmatmul.bf16.vlgmr.msra.gmra.mxu1 %v83_v23 }
  0x96   :  { %v80_v24 = vpop.f32.mrf.mxu0 }
 0x112   :  { %v161_v26 = vpop.f32.mrf.mxu1 }
 0x113   :  { %v162_v27 = vadd.f32 %v295_v25, %v161_v26 }
 0x115   :  { %v165_v28 = vmax.f32 %v162_v27, 0.0 }
 0x117   :  { %278 = vmatpush.xpose.msk.msra.mxu2 %vm169_vm3, %v165_v28 }
 0x11a   :  { %v163_v30 = vpop.f32.mrf.mxu1  ;;  %279 = vmatmul.msk.f32.vlgmr.msra.gmra.mxu2 %vm169_vm3, %v166_v29 }
 0x19d   :  { %v193_v32 = vpop.f32.mrf.mxu2 }
 0x19e   :  { %v194_v33 = vadd.f32 %v193_v32, %v168_v31 }
 0x1a0   :  { %v280_v34 = vmul.f32 -1.442695, %v194_v33 }
 0x1a2   :  { %296 = vpow2.f32 %v280_v34 }
 0x1a8   :  { %v297_v35 = vpop.eup %296 }
 0x1a9   :  { %v199_v36 = vadd.f32 1.0, %v297_v35 }
 0x1ab   :  { %298 = vrcp.f32 %v199_v36  ;;  %v211_v40 = vand.u32 2147483648, %v199_v36  ;;  %v209_v42 = vand.u32 2147483647, %v199_v36  ;;  %vm205_vm5 = vweird.f32 %v199_v36 }
 0x1ad   :  { %v212_v44 = vor.u32 1.1754944e-38, %v211_v40  ;;  %vm210_vm8 = vcmp.eq.f32.partialorder %v209_v42, 8.507059e+37 }
 0x1b1   :  { %v299_v37 = vpop.eup %298 }
 0x1b2   :  { %v201_v38 = vmul.f32 %v299_v37, %v199_v36  ;;  %vm206_vm4 = vweird.f32 %v299_v37 }
 0x1b3   :  { %vm207_vm6 = vmor %vm205_vm5, %vm206_vm4 }
 0x1b4   :  { %v202_v39 = vsub.f32 1.0, %v201_v38 }
 0x1b6   :  { %v203_v41 = vmul.f32 %v299_v37, %v202_v39 }
 0x1b8   :  { %v204_v43 = vadd.f32 %v299_v37, %v203_v41 }
 0x1ba   :  { %v208_v45 = vsel %vm207_vm6, %v299_v37, %v204_v43 }
 0x1bb   :  { %v213_v46 = vsel %vm210_vm8, %v212_v44, %v208_v45 }
 0x1bc   :  { %216 = vst.msk [vmem:[#allocation3] sm:$0x1] %vm215_vm7, %v213_v46 }
 0x1bd   :  { %227 = dma.vmem_to_hbm [thread:$0]  %s223_s5, 16, %s225_s6, [#allocation4]  }
 0x1be   :  { %324 = dma.done.wait [#allocation4], 16  }
 0x1bf   :  { %325 = vsyncadd [#allocation4], 4294967280 }
 0x1c0   :  { %232 = vsyncpa [#allocation4], 1 }

</bundles_post_ra>
